<compile_context>
chip_gen: v7x
topology: tpu7x:2x2x1
jax: 0.10.0
libtpu: 0.0.40
codegen_flags: <defaults>
</compile_context>

<pallas_src>
import functools

import jax
import jax.numpy as jnp
from jax.experimental import pallas as pl
from jax.experimental.pallas import tpu as pltpu


@functools.lru_cache(maxsize=1)
def _vmem_capacity_bytes() -> int:
    """Physical VMEM per TensorCore; conservative fallback if the query fails."""
    try:
        info = pltpu.get_tpu_info()
        cap = getattr(info, "vmem_capacity_bytes", None)
        if cap:
            return int(cap)
    except Exception:
        pass
    return 64 * 1024 * 1024  # v7x physical per-TC VMEM (smallest of the targets)


def _choose_tile(C, HW, x_itemsize, t_itemsize, vmem_cap):
    """Largest 128-multiple TM whose double-buffered input tiles fit the VMEM budget."""
    c_pad = ((C + 7) // 8) * 8                                 # sublane padding of (C, TM) tiles
    per_lane_bytes = 2 * c_pad * (x_itemsize + t_itemsize)     # 2 buffers per input
    budget = min(vmem_cap // 4, 32 * 1024 * 1024)              # leave ample headroom
    tm = (budget // per_lane_bytes) // 128 * 128
    hw128 = ((HW + 127) // 128) * 128
    return max(128, min(tm, hw128))


def _bce_dice_kernel(x_ref, t_ref, inter_ref, s2_ref, t2_ref, bce_ref):
    """Process one (C, TM) tile of logits/targets for batch index n = program_id(0).

    Resident accumulators across the reduction axis j = program_id(1):
      inter_ref: (C, 1)  sum_j sigmoid(x) * t
      s2_ref   : (C, 1)  sum_j sigmoid(x)^2
      t2_ref   : (C, 1)  sum_j t^2
      bce_ref  : (1, 1)  sum over the tile of BCE-with-logits terms
    """
    j = pl.program_id(1)

    @pl.when(j == 0)
    def _():
        inter_ref[...] = jnp.zeros_like(inter_ref)
        s2_ref[...] = jnp.zeros_like(s2_ref)
        t2_ref[...] = jnp.zeros_like(t2_ref)
        bce_ref[...] = jnp.zeros_like(bce_ref)

    x = x_ref[...].astype(jnp.float32)   # cast after the VMEM load (native-dtype DMA)
    t = t_ref[...].astype(jnp.float32)

    # Share exp(-|x|) between sigmoid and the BCE log term (fewer EUP ops / element).
    e = jnp.exp(-jnp.abs(x))
    inv = 1.0 / (1.0 + e)                    # sigmoid(|x|)
    s = jnp.where(x >= 0.0, inv, e * inv)    # sigmoid(x), overflow-safe

    # Numerically stable BCE-with-logits: max(x,0) - x*t + log1p(exp(-|x|)).
    bce = jnp.maximum(x, 0.0) - x * t + jnp.log1p(e)

    inter_ref[...] += jnp.sum(s * t, axis=-1, keepdims=True)
    s2_ref[...] += jnp.sum(s * s, axis=-1, keepdims=True)
    t2_ref[...] += jnp.sum(t * t, axis=-1, keepdims=True)
    bce_ref[...] += jnp.sum(bce)


@functools.partial(jax.jit, static_argnames=("alpha", "beta", "epsilon"))
def bce_dice_loss(x, target, *, alpha=1.0, beta=1.0, epsilon=1e-6):
    """alpha * BCEWithLogitsLoss(x, target) + beta * DiceLoss(x, target).

    x, target: (N, C, *spatial) arrays; `x` are logits (DiceLoss applies sigmoid
    internally, normalization='sigmoid', weight=None).
    """
    assert x.shape == target.shape, "'input' and 'target' must have the same shape"
    N, C = x.shape[0], x.shape[1]
    HW = 1
    for d in x.shape[2:]:
        HW *= d

    if target.dtype == jnp.bool_:
        target = target.astype(x.dtype)

    # Free reshape only (no transpose, no upcast): (N, C, *spatial) -> (N, C, HW).
    x3 = x.reshape(N, C, HW)
    t3 = target.reshape(N, C, HW)

    vmem_cap = _vmem_capacity_bytes()
    TM = _choose_tile(C, HW, x3.dtype.itemsize, t3.dtype.itemsize, vmem_cap)
    grid_j = pl.cdiv(HW, TM)
    HW_pad = grid_j * TM
    if HW_pad != HW:
        pad = HW_pad - HW
        # Pad logits with a large negative constant and targets with 0 so pad
        # elements contribute ~0 everywhere; means below use the true count HW.
        x3 = jnp.pad(x3, ((0, 0), (0, 0), (0, pad)), constant_values=-30.0)
        t3 = jnp.pad(t3, ((0, 0), (0, 0), (0, pad)), constant_values=0.0)

    inter, s2, t2, bce_part = pl.pallas_call(
        _bce_dice_kernel,
        out_shape=(
            jax.ShapeDtypeStruct((N, C, 1), jnp.float32),
            jax.ShapeDtypeStruct((N, C, 1), jnp.float32),
            jax.ShapeDtypeStruct((N, C, 1), jnp.float32),
            jax.ShapeDtypeStruct((N, 1, 1), jnp.float32),
        ),
        grid_spec=pltpu.PrefetchScalarGridSpec(
            num_scalar_prefetch=0,
            grid=(N, grid_j),
            in_specs=[
                pl.BlockSpec((None, C, TM), lambda n, j: (n, 0, j)),
                pl.BlockSpec((None, C, TM), lambda n, j: (n, 0, j)),
            ],
            out_specs=[
                pl.BlockSpec((None, C, 1), lambda n, j: (n, 0, 0)),
                pl.BlockSpec((None, C, 1), lambda n, j: (n, 0, 0)),
                pl.BlockSpec((None, C, 1), lambda n, j: (n, 0, 0)),
                pl.BlockSpec((None, 1, 1), lambda n, j: (n, 0, 0)),
            ],
        ),
        compiler_params=pltpu.CompilerParams(
            # Batch axis parallel (uses both TCs on v7x); reduction axis arbitrary.
            dimension_semantics=("parallel", "arbitrary"),
            vmem_limit_bytes=int(vmem_cap * 3 // 4),
        ),
    )(x3, t3)

    # Tiny scalar epilogue in plain JAX.
    inter_c = jnp.sum(inter[..., 0], axis=0)   # (C,)
    s2_c = jnp.sum(s2[..., 0], axis=0)
    t2_c = jnp.sum(t2[..., 0], axis=0)
    bce_mean = jnp.sum(bce_part) / (N * C * HW)
    per_channel_dice = 2.0 * inter_c / jnp.maximum(s2_c + t2_c, epsilon)
    dice_loss = 1.0 - jnp.mean(per_channel_dice)
    return alpha * bce_mean + beta * dice_loss


def _reference_loss(x, target, alpha, beta, epsilon=1e-6):
    """Pure-JAX reference mirroring the PyTorch module, for validation."""
    x = x.astype(jnp.float32)
    t = target.astype(jnp.float32)
    bce = jnp.mean(jnp.maximum(x, 0.0) - x * t + jnp.log1p(jnp.exp(-jnp.abs(x))))
    C = x.shape[1]
    axis_order = (1, 0) + tuple(range(2, x.ndim))
    s = jax.nn.sigmoid(x)
    sf = jnp.transpose(s, axis_order).reshape(C, -1)
    tf = jnp.transpose(t, axis_order).reshape(C, -1)
    inter = jnp.sum(sf * tf, axis=-1)
    denom = jnp.sum(sf * sf, axis=-1) + jnp.sum(tf * tf, axis=-1)
    dice = 2.0 * inter / jnp.maximum(denom, epsilon)
    return alpha * bce + beta * (1.0 - jnp.mean(dice))


if __name__ == "__main__":
    # Deterministic "parameters" of BCEDiceLoss(alpha, beta):
    ALPHA = 0.7
    BETA = 0.3

    key = jax.random.PRNGKey(0)
    kx, kt, kx2, kt2 = jax.random.split(key, 4)

    # Main check: lane-aligned spatial size.
    N, C, H, W = 2, 4, 16, 16
    x = jax.random.normal(kx, (N, C, H, W), dtype=jnp.float32)              # logits
    target = jax.random.bernoulli(kt, 0.5, (N, C, H, W)).astype(jnp.float32)

    loss = bce_dice_loss(x, target, alpha=ALPHA, beta=BETA)
    loss = jax.block_until_ready(loss)
    ref = _reference_loss(x, target, ALPHA, BETA)
    assert jnp.allclose(loss, ref, rtol=1e-4, atol=1e-5), (loss, ref)

    # Secondary check: spatial size not a multiple of 128 (exercises padding path).
    N2, C2, H2, W2 = 2, 4, 15, 15
    x2 = jax.random.normal(kx2, (N2, C2, H2, W2), dtype=jnp.float32)
    t2 = jax.random.bernoulli(kt2, 0.5, (N2, C2, H2, W2)).astype(jnp.float32)
    loss2 = jax.block_until_ready(bce_dice_loss(x2, t2, alpha=ALPHA, beta=BETA))
    ref2 = _reference_loss(x2, t2, ALPHA, BETA)
    assert jnp.allclose(loss2, ref2, rtol=1e-4, atol=1e-5), (loss2, ref2)

    print("KERNEL_OK")
</pallas_src>

<mosaic_0001>
module attributes {stable_mosaic.version = 11 : i64} {
  func.func @_bce_dice_kernel(%arg0: i32, %arg1: i32, %arg2: memref<1x4x256xf32, #tpu.memory_space<vmem>>, %arg3: memref<1x4x256xf32, #tpu.memory_space<vmem>>, %arg4: memref<1x4x1xf32, #tpu.memory_space<vmem>>, %arg5: memref<1x4x1xf32, #tpu.memory_space<vmem>>, %arg6: memref<1x4x1xf32, #tpu.memory_space<vmem>>, %arg7: memref<1x1x1xf32, #tpu.memory_space<vmem>>) attributes {dimension_semantics = [#tpu.dimension_semantics<parallel>, #tpu.dimension_semantics<arbitrary>], iteration_bounds = array<i64: 2, 1>, scalar_prefetch = 0 : i64, scratch_operands = 0 : i64, tpu.core_type = #tpu.core_type<tc>, window_params = [{transform_indices = @transform_0, window_bounds = array<i64: 1, 4, 256>}, {transform_indices = @transform_1, window_bounds = array<i64: 1, 4, 256>}, {transform_indices = @transform_2, window_bounds = array<i64: 1, 4, 1>}, {transform_indices = @transform_3, window_bounds = array<i64: 1, 4, 1>}, {transform_indices = @transform_4, window_bounds = array<i64: 1, 4, 1>}, {transform_indices = @transform_5, window_bounds = array<i64: 1, 1, 1>}]} {
    %c0_i32 = arith.constant 0 : i32
    %0 = arith.cmpi eq, %arg1, %c0_i32 : i32
    %1 = arith.extui %0 : i1 to i32
    %c0_i32_0 = arith.constant 0 : i32
    %2 = arith.cmpi ne, %1, %c0_i32_0 : i32
    scf.if %2 {
      %cst_38 = arith.constant 0.000000e+00 : f32
      %63 = vector.broadcast %cst_38 : f32 to vector<4x1xf32>
      %c0_39 = arith.constant 0 : index
      %c0_40 = arith.constant 0 : index
      %c0_41 = arith.constant 0 : index
      %64 = vector.load %arg4[%c0_39, %c0_40, %c0_41] : memref<1x4x1xf32, #tpu.memory_space<vmem>>, vector<1x4x1xf32>
      %65 = vector.shape_cast %64 : vector<1x4x1xf32> to vector<4x1xf32>
      %66 = vector.shape_cast %63 : vector<4x1xf32> to vector<1x4x1xf32>
      tpu.vector_store %arg4[%c0_39, %c0_40, %c0_41], %66 {strides = array<i32>} : memref<1x4x1xf32, #tpu.memory_space<vmem>>, vector<1x4x1xf32>,
      %cst_42 = arith.constant 0.000000e+00 : f32
      %67 = vector.broadcast %cst_42 : f32 to vector<4x1xf32>
      %c0_43 = arith.constant 0 : index
      %c0_44 = arith.constant 0 : index
      %c0_45 = arith.constant 0 : index
      %68 = vector.load %arg5[%c0_43, %c0_44, %c0_45] : memref<1x4x1xf32, #tpu.memory_space<vmem>>, vector<1x4x1xf32>
      %69 = vector.shape_cast %68 : vector<1x4x1xf32> to vector<4x1xf32>
      %70 = vector.shape_cast %67 : vector<4x1xf32> to vector<1x4x1xf32>
      tpu.vector_store %arg5[%c0_43, %c0_44, %c0_45], %70 {strides = array<i32>} : memref<1x4x1xf32, #tpu.memory_space<vmem>>, vector<1x4x1xf32>,
      %cst_46 = arith.constant 0.000000e+00 : f32
      %71 = vector.broadcast %cst_46 : f32 to vector<4x1xf32>
      %c0_47 = arith.constant 0 : index
      %c0_48 = arith.constant 0 : index
      %c0_49 = arith.constant 0 : index
      %72 = vector.load %arg6[%c0_47, %c0_48, %c0_49] : memref<1x4x1xf32, #tpu.memory_space<vmem>>, vector<1x4x1xf32>
      %73 = vector.shape_cast %72 : vector<1x4x1xf32> to vector<4x1xf32>
      %74 = vector.shape_cast %71 : vector<4x1xf32> to vector<1x4x1xf32>
      tpu.vector_store %arg6[%c0_47, %c0_48, %c0_49], %74 {strides = array<i32>} : memref<1x4x1xf32, #tpu.memory_space<vmem>>, vector<1x4x1xf32>,
      %cst_50 = arith.constant 0.000000e+00 : f32
      %75 = vector.broadcast %cst_50 : f32 to vector<1x1xf32>
      %c0_51 = arith.constant 0 : index
      %c0_52 = arith.constant 0 : index
      %c0_53 = arith.constant 0 : index
      %76 = vector.load %arg7[%c0_51, %c0_52, %c0_53] : memref<1x1x1xf32, #tpu.memory_space<vmem>>, vector<1x1x1xf32>
      %77 = vector.shape_cast %76 : vector<1x1x1xf32> to vector<1x1xf32>
      %78 = vector.shape_cast %75 : vector<1x1xf32> to vector<1x1x1xf32>
      tpu.vector_store %arg7[%c0_51, %c0_52, %c0_53], %78 {strides = array<i32>} : memref<1x1x1xf32, #tpu.memory_space<vmem>>, vector<1x1x1xf32>,
    } else {
    }
    %c0 = arith.constant 0 : index
    %c0_1 = arith.constant 0 : index
    %c0_2 = arith.constant 0 : index
    %3 = vector.load %arg2[%c0, %c0_1, %c0_2] : memref<1x4x256xf32, #tpu.memory_space<vmem>>, vector<1x4x256xf32>
    %4 = vector.shape_cast %3 : vector<1x4x256xf32> to vector<4x256xf32>
    %c0_3 = arith.constant 0 : index
    %c0_4 = arith.constant 0 : index
    %c0_5 = arith.constant 0 : index
    %5 = vector.load %arg3[%c0_3, %c0_4, %c0_5] : memref<1x4x256xf32, #tpu.memory_space<vmem>>, vector<1x4x256xf32>
    %6 = vector.shape_cast %5 : vector<1x4x256xf32> to vector<4x256xf32>
    %7 = math.absf %4 : vector<4x256xf32>
    %cst = arith.constant 0.000000e+00 : f32
    %8 = vector.broadcast %cst : f32 to vector<4x256xf32>
    %9 = arith.subf %8, %7 : vector<4x256xf32>
    %10 = math.exp %9 : vector<4x256xf32>
    %cst_6 = arith.constant 1.000000e+00 : f32
    %11 = vector.broadcast %cst_6 : f32 to vector<4x256xf32>
    %12 = arith.addf %11, %10 : vector<4x256xf32>
    %cst_7 = arith.constant 1.000000e+00 : f32
    %13 = vector.broadcast %cst_7 : f32 to vector<4x256xf32>
    %14 = arith.divf %13, %12 : vector<4x256xf32>
    %cst_8 = arith.constant 0.000000e+00 : f32
    %15 = vector.broadcast %cst_8 : f32 to vector<4x256xf32>
    %16 = arith.cmpf oge, %4, %15 : vector<4x256xf32>
    %17 = arith.mulf %10, %14 : vector<4x256xf32>
    %18 = arith.select %16, %14, %17 : vector<4x256xi1>, vector<4x256xf32>
    %cst_9 = arith.constant 0.000000e+00 : f32
    %19 = vector.broadcast %cst_9 : f32 to vector<4x256xf32>
    %20 = arith.maximumf %4, %19 : vector<4x256xf32>
    %21 = arith.mulf %4, %6 : vector<4x256xf32>
    %22 = arith.subf %20, %21 : vector<4x256xf32>
    %23 = math.log1p %10 : vector<4x256xf32>
    %24 = arith.addf %22, %23 : vector<4x256xf32>
    %c0_10 = arith.constant 0 : index
    %c0_11 = arith.constant 0 : index
    %c0_12 = arith.constant 0 : index
    %25 = vector.load %arg4[%c0_10, %c0_11, %c0_12] : memref<1x4x1xf32, #tpu.memory_space<vmem>>, vector<1x4x1xf32>
    %26 = vector.shape_cast %25 : vector<1x4x1xf32> to vector<4x1xf32>
    %27 = arith.mulf %18, %6 : vector<4x256xf32>
    %cst_13 = arith.constant dense<0.000000e+00> : vector<4xf32>
    %28 = vector.multi_reduction <add>, %27, %cst_13 [1] : vector<4x256xf32> to vector<4xf32>
    %29 = vector.shape_cast %28 : vector<4xf32> to vector<4x1xf32>
    %30 = arith.addf %26, %29 : vector<4x1xf32>
    %c0_14 = arith.constant 0 : index
    %c0_15 = arith.constant 0 : index
    %c0_16 = arith.constant 0 : index
    %31 = vector.load %arg4[%c0_14, %c0_15, %c0_16] : memref<1x4x1xf32, #tpu.memory_space<vmem>>, vector<1x4x1xf32>
    %32 = vector.shape_cast %31 : vector<1x4x1xf32> to vector<4x1xf32>
    %33 = vector.shape_cast %30 : vector<4x1xf32> to vector<1x4x1xf32>
    tpu.vector_store %arg4[%c0_14, %c0_15, %c0_16], %33 {strides = array<i32>} : memref<1x4x1xf32, #tpu.memory_space<vmem>>, vector<1x4x1xf32>,
    %c0_17 = arith.constant 0 : index
    %c0_18 = arith.constant 0 : index
    %c0_19 = arith.constant 0 : index
    %34 = vector.load %arg5[%c0_17, %c0_18, %c0_19] : memref<1x4x1xf32, #tpu.memory_space<vmem>>, vector<1x4x1xf32>
    %35 = vector.shape_cast %34 : vector<1x4x1xf32> to vector<4x1xf32>
    %36 = arith.mulf %18, %18 : vector<4x256xf32>
    %cst_20 = arith.constant dense<0.000000e+00> : vector<4xf32>
    %37 = vector.multi_reduction <add>, %36, %cst_20 [1] : vector<4x256xf32> to vector<4xf32>
    %38 = vector.shape_cast %37 : vector<4xf32> to vector<4x1xf32>
    %39 = arith.addf %35, %38 : vector<4x1xf32>
    %c0_21 = arith.constant 0 : index
    %c0_22 = arith.constant 0 : index
    %c0_23 = arith.constant 0 : index
    %40 = vector.load %arg5[%c0_21, %c0_22, %c0_23] : memref<1x4x1xf32, #tpu.memory_space<vmem>>, vector<1x4x1xf32>
    %41 = vector.shape_cast %40 : vector<1x4x1xf32> to vector<4x1xf32>
    %42 = vector.shape_cast %39 : vector<4x1xf32> to vector<1x4x1xf32>
    tpu.vector_store %arg5[%c0_21, %c0_22, %c0_23], %42 {strides = array<i32>} : memref<1x4x1xf32, #tpu.memory_space<vmem>>, vector<1x4x1xf32>,
    %c0_24 = arith.constant 0 : index
    %c0_25 = arith.constant 0 : index
    %c0_26 = arith.constant 0 : index
    %43 = vector.load %arg6[%c0_24, %c0_25, %c0_26] : memref<1x4x1xf32, #tpu.memory_space<vmem>>, vector<1x4x1xf32>
    %44 = vector.shape_cast %43 : vector<1x4x1xf32> to vector<4x1xf32>
    %45 = arith.mulf %6, %6 : vector<4x256xf32>
    %cst_27 = arith.constant dense<0.000000e+00> : vector<4xf32>
    %46 = vector.multi_reduction <add>, %45, %cst_27 [1] : vector<4x256xf32> to vector<4xf32>
    %47 = vector.shape_cast %46 : vector<4xf32> to vector<4x1xf32>
    %48 = arith.addf %44, %47 : vector<4x1xf32>
    %c0_28 = arith.constant 0 : index
    %c0_29 = arith.constant 0 : index
    %c0_30 = arith.constant 0 : index
    %49 = vector.load %arg6[%c0_28, %c0_29, %c0_30] : memref<1x4x1xf32, #tpu.memory_space<vmem>>, vector<1x4x1xf32>
    %50 = vector.shape_cast %49 : vector<1x4x1xf32> to vector<4x1xf32>
    %51 = vector.shape_cast %48 : vector<4x1xf32> to vector<1x4x1xf32>
    tpu.vector_store %arg6[%c0_28, %c0_29, %c0_30], %51 {strides = array<i32>} : memref<1x4x1xf32, #tpu.memory_space<vmem>>, vector<1x4x1xf32>,
    %c0_31 = arith.constant 0 : index
    %c0_32 = arith.constant 0 : index
    %c0_33 = arith.constant 0 : index
    %52 = vector.load %arg7[%c0_31, %c0_32, %c0_33] : memref<1x1x1xf32, #tpu.memory_space<vmem>>, vector<1x1x1xf32>
    %53 = vector.shape_cast %52 : vector<1x1x1xf32> to vector<1x1xf32>
    %54 = vector.shape_cast %24 : vector<4x256xf32> to vector<1x4x256xf32>
    %cst_34 = arith.constant dense<0.000000e+00> : vector<1xf32>
    %55 = vector.multi_reduction <add>, %54, %cst_34 [1, 2] : vector<1x4x256xf32> to vector<1xf32>
    %56 = vector.shape_cast %55 : vector<1xf32> to vector<1x1x1xf32>
    %57 = vector.extract %56[0, 0, 0] : f32 from vector<1x1x1xf32>
    %58 = vector.broadcast %57 : f32 to vector<1x1xf32>
    %59 = arith.addf %53, %58 : vector<1x1xf32>
    %c0_35 = arith.constant 0 : index
    %c0_36 = arith.constant 0 : index
    %c0_37 = arith.constant 0 : index
    %60 = vector.load %arg7[%c0_35, %c0_36, %c0_37] : memref<1x1x1xf32, #tpu.memory_space<vmem>>, vector<1x1x1xf32>
    %61 = vector.shape_cast %60 : vector<1x1x1xf32> to vector<1x1xf32>
    %62 = vector.shape_cast %59 : vector<1x1xf32> to vector<1x1x1xf32>
    tpu.vector_store %arg7[%c0_35, %c0_36, %c0_37], %62 {strides = array<i32>} : memref<1x1x1xf32, #tpu.memory_space<vmem>>, vector<1x1x1xf32>,
    return
  }
  func.func @transform_0(%arg0: i32, %arg1: i32) -> (i32, i32, i32) {
    %c0_i32 = arith.constant 0 : i32
    %c0_i32_0 = arith.constant 0 : i32
    return %arg0, %c0_i32, %arg1 : i32, i32, i32
  }
  func.func @transform_1(%arg0: i32, %arg1: i32) -> (i32, i32, i32) {
    %c0_i32 = arith.constant 0 : i32
    %c0_i32_0 = arith.constant 0 : i32
    return %arg0, %c0_i32, %arg1 : i32, i32, i32
  }
  func.func @transform_2(%arg0: i32, %arg1: i32) -> (i32, i32, i32) {
    %c0_i32 = arith.constant 0 : i32
    %c0_i32_0 = arith.constant 0 : i32
    %c0_i32_1 = arith.constant 0 : i32
    return %arg0, %c0_i32, %c0_i32_0 : i32, i32, i32
  }
  func.func @transform_3(%arg0: i32, %arg1: i32) -> (i32, i32, i32) {
    %c0_i32 = arith.constant 0 : i32
    %c0_i32_0 = arith.constant 0 : i32
    %c0_i32_1 = arith.constant 0 : i32
    return %arg0, %c0_i32, %c0_i32_0 : i32, i32, i32
  }
  func.func @transform_4(%arg0: i32, %arg1: i32) -> (i32, i32, i32) {
    %c0_i32 = arith.constant 0 : i32
    %c0_i32_0 = arith.constant 0 : i32
    %c0_i32_1 = arith.constant 0 : i32
    return %arg0, %c0_i32, %c0_i32_0 : i32, i32, i32
  }
  func.func @transform_5(%arg0: i32, %arg1: i32) -> (i32, i32, i32) {
    %c0_i32 = arith.constant 0 : i32
    %c0_i32_0 = arith.constant 0 : i32
    %c0_i32_1 = arith.constant 0 : i32
    return %arg0, %c0_i32, %c0_i32_0 : i32, i32, i32
  }
}

</mosaic_0001>

<bundles_post_ra>
// kernel: bce_dice_loss.1
= control target key start
LH: loop header
LB: loop body
LE: loop exit
PB: predicated region body
PF: predicated region fallthrough
CT: control target
= control target key end

     0   :  { %s685_s18 = smov 0   ;;  %s687_s19 = smov 0   ;;  %s756_s0 = inlined_call_operand.vmem [shape: f32[2,4,256], index: 0, kind: input, shape index: {}]   ;;  %s757_s1 = inlined_call_operand.vmem [shape: f32[2,4,256], index: 1, kind: input, shape index: {}]   ;;  %s758_s2 = inlined_call_operand.vmem [shape: f32[2,4,1], index: 2, kind: output, shape index: {0}]   ;;  %s759_s3 = inlined_call_operand.vmem [shape: f32[2,4,1], index: 3, kind: output, shape index: {1}]   ;;  %s760_s4 = inlined_call_operand.vmem [shape: f32[2,4,1], index: 4, kind: output, shape index: {2}]   ;;  %s761_s5 = inlined_call_operand.vmem [shape: f32[2,1,1], index: 5, kind: output, shape index: {3}]  }
   0x1   :  { %s689_s20 = smov 0  }
   0x2 LB: > { %s28_s21 = sadd.s32 1, %s648_s19  ;;  %p585_p0 = scmp.ge.s32.totalorder %s652_s20, 1  ;;  %s652_s20 = sphi %s689_s20, %s16_s20   ;;  %s648_s19 = sphi %s687_s19, %s763_s19   ;;  %s644_s18 = sphi %s685_s18, %s762_s18  }
   0x3   : > { %p30_p1 = scmp.ge.s32.totalorder %s28_s21, 2  ;;  %p230_p2 = scmp.lt.s32.totalorder %s652_s20, 3 }
   0x5   : > { %s765_s21 = smov (%p30_p1, %s28_s21), 0  ;;  %p231_p3 = pnand %p585_p0, %p230_p2 }
   0x6   : > { %p282_p4 = scmp.lt.s32.totalorder (!%p231_p3), %s644_s18, 1  ;;  %vm356_vm2 = vcmask (!%p231_p3), 1043456   ;;  %vm320_vm3 = vcmask (!%p231_p3), 3072   ;;  %vm324_vm4 = vcmask (!%p231_p3), 0   ;;  %v654_v40 = vmov (!%p231_p3), 0.0  }
   0x7   : > { %234 = sbr.rel (%p231_p3) target bundleno = 266 (0x10a), region = 28 }
   0xe   : > { %s767_s18 = smov (!%p282_p4, %s644_s18), 1 }
   0xf   : > { %s595_s22 = sshll.u32 %s767_s18, 3  ;;  %s590_s29 = sshll.u32 %s767_s18, 2 }
  0x10   : > { %s289_s25 = scalar_lea.vmem %s756_s0, %s595_s22  ;;  %s299_s28 = scalar_lea.vmem %s757_s1, %s595_s22 }
  0x11   : > { %v326_v0 = vld [vmem:[%s289_s25] sm:$0xff]  ;;  %s725_s7 = scalar_lea.vmem %s761_s5, %s767_s18  ;;  %s308_s10 = scalar_lea.vmem %s759_s3, %s590_s29 }
  0x12   : > { %v328_v1 = vand.u32 2147483647, %v326_v0  ;;  %v327_v7 = vld [vmem:[%s299_s28] sm:$0xff]  ;;  %v338_v9 = vmax.f32 %v326_v0, 0.0  ;;  %vm335_vm1 = vcmp.ge.f32.partialorder %v326_v0, 0.0  ;;  %s312_s13 = scalar_lea.vmem %s760_s4, %s590_s29  ;;  %s304_s16 = scalar_lea.vmem %s758_s2, %s590_s29 }
  0x13   : > { %v339_v10 = vmul.f32 %v327_v7, %v326_v0  ;;  %v378_v17 = vmul.f32 %v327_v7, %v327_v7  ;;  %325 = vst.msk [vmem:[%s725_s7] sm:$0x1] %vm324_vm4, %v654_v40 }
  0x14   : > { %v329_v2 = vsub.f32 0.0, %v328_v1  ;;  %322 = vst.msk [vmem:[%s308_s10] sm:$0xf] %vm320_vm3, %v654_v40  ;;  %323 = vst.msk [vmem:[%s312_s13] sm:$0xf] %vm320_vm3, %v654_v40 }
  0x15   : > { %v340_v14 = vsub.f32 %v338_v9, %v339_v10  ;;  %v380_v23 = vcombine.high %v378_v17, %v378_v17  ;;  %v382_v31 = vsel %vm356_vm2, %v378_v17, 0.0  ;;  %321 = vst.msk [vmem:[%s304_s16] sm:$0xf] %vm320_vm3, %v654_v40 }
  0x16   : > { %v330_v3 = vmul.f32 1.442695, %v329_v2 }
  0x17   : > { %v383_v35 = vsel %vm356_vm2, %v380_v23, 0.0 }
  0x18   : > { %624 = vpow2.f32 %v330_v3  ;;  %v384_v39 = vadd.f32 %v383_v35, %v382_v31 }
  0x1a   : > { %v389_v57 = vld [vmem:[%s725_s7] sm:$0x1] }
  0x1b   : > { %v365_v41 = vld [vmem:[%s308_s10] sm:$0xf] }
  0x1c   : > { %v351_v46 = vld [vmem:[%s304_s16] sm:$0xf] }
  0x1d   : > { %v377_v48 = vld [vmem:[%s312_s13] sm:$0xf] }
  0x22   : > { %v625_v4 = vpop.eup %624 }
  0x23   : > { %v332_v5 = vadd.f32 1.0, %v625_v4  ;;  %v344_v6 = vmul.f32 -0.5, %v625_v4  ;;  %v347_v11 = vand.u32 2147483647, %v625_v4 }
  0x25   : > { %626 = vlog2.f32 %v332_v5  ;;  %v345_v8 = vadd.f32 1.0, %v344_v6  ;;  %vm348_vm0 = vcmp.lt.f32.partialorder %v347_v11, 0.0004427343 }
  0x26   : > { %628 = vrcp.f32 %v332_v5 }
  0x27   : > { %v346_v12 = vmul.f32 %v625_v4, %v345_v8 }
  0x2f   : > { %v627_v13 = vpop.eup %626 }
  0x30   : > { %v629_v15 = vpop.eup %628  ;;  %v343_v16 = vmul.f32 0.6931472, %v627_v13 }
  0x31   : > { %v336_v18 = vmul.f32 %v629_v15, %v625_v4 }
  0x32   : > { %v349_v19 = vsel %vm348_vm0, %v346_v12, %v343_v16 }
  0x33   : > { %v350_v20 = vadd.f32 %v349_v19, %v340_v14  ;;  %v337_v21 = vsel %vm335_vm1, %v629_v15, %v336_v18 }
  0x34   : > { %v366_v22 = vmul.f32 %v337_v21, %v337_v21  ;;  %v352_v24 = vmul.f32 %v337_v21, %v327_v7 }
  0x35   : > { %v391_v25 = vcombine.high %v350_v20, %v350_v20  ;;  %v393_v26 = vsel %vm356_vm2, %v350_v20, 0.0 }
  0x36   : > { %v368_v27 = vcombine.high %v366_v22, %v366_v22  ;;  %v370_v28 = vsel %vm356_vm2, %v366_v22, 0.0  ;;  %v354_v29 = vcombine.high %v352_v24, %v352_v24  ;;  %v357_v32 = vsel %vm356_vm2, %v352_v24, 0.0 }
  0x37   : > { %v394_v30 = vsel %vm356_vm2, %v391_v25, 0.0 }
  0x38   : > { %v395_v33 = vadd.f32 %v394_v30, %v393_v26  ;;  %v371_v34 = vsel %vm356_vm2, %v368_v27, 0.0  ;;  %v358_v36 = vsel %vm356_vm2, %v354_v29, 0.0 }
  0x39   : > { %v372_v37 = vadd.f32 %v371_v34, %v370_v28  ;;  %v359_v38 = vadd.f32 %v358_v36, %v357_v32 }
  0x3a   : > { %396 = vadd.xlane.f32.xlu0 %v395_v33 }
  0x3b   : > { %373 = vadd.xlane.f32.xlu1 %v372_v37 }
  0x3e   : > { %360 = vadd.xlane.f32.xlu0 %v359_v38 }
  0x3f   : > { %385 = vadd.xlane.f32.xlu1 %v384_v39 }
  0xc7   : > { %v397_v42 = vpop.xlane.xlu0 %396 }
  0xc8   : > { %v398_v43 = vrot.slane %v397_v42, 4  ;;  %v374_v44 = vpop.xlane.xlu1 %373 }
  0xc9   : > { %v375_v45 = vadd.f32 %v374_v44, %v365_v41 }
  0xca   : > { %v399_v47 = vadd.f32 %v398_v43, %v397_v42 }
  0xcb   : > { %376 = vst.msk [vmem:[%s308_s10] sm:$0xf] %vm320_vm3, %v375_v45  ;;  %v361_v49 = vpop.xlane.xlu0 %360 }
  0xcc   : > { %v400_v50 = vrot.slane %v399_v47, 2  ;;  %v386_v51 = vpop.xlane.xlu1 %385  ;;  %v362_v52 = vadd.f32 %v361_v49, %v351_v46 }
  0xcd   : > { %v387_v53 = vadd.f32 %v386_v51, %v377_v48 }
  0xce   : > { %v401_v54 = vadd.f32 %v400_v50, %v399_v47  ;;  %364 = vst.msk [vmem:[%s304_s16] sm:$0xf] %vm320_vm3, %v362_v52 }
  0xcf   : > { %388 = vst.msk [vmem:[%s312_s13] sm:$0xf] %vm320_vm3, %v387_v53 }
  0xd0   : > { %v402_v55 = vrot.slane %v401_v54, 1 }
  0xd2   : > { %v403_v56 = vadd.f32 %v402_v55, %v401_v54 }
  0xd4   : > { %597 = vpush %v403_v56 }
 0x105   : > { %s598_s17 = spop %597 }
 0x106   : > { %v405_v58 = vstv %s598_s17 }
 0x107   : > { %v406_v59 = vadd.f32 %v405_v58, %v389_v57 }
 0x109   : > { %408 = vst.msk [vmem:[%s725_s7] sm:$0x1] %vm324_vm4, %v406_v59 }
 0x10a PF: > { %s16_s20 = sadd.s32 1, %s652_s20   ;;  %s762_s18 = smov %s648_s19 }
 0x10b   : > { %p13_p5 = scmp.ge.s32.totalorder %s16_s20, 4   ;;  %s763_s19 = smov %s765_s21 }
 0x10d   :  { %15 = sbr.rel (!%p13_p5) target bundleno = 2 (0x2), region = 101 }

</bundles_post_ra>
